<compile_context>
chip_gen: v7x
topology: tpu7x:2x2x1
jax: 0.10.0
libtpu: 0.0.40
codegen_flags: <defaults>
</compile_context>

<pallas_src>
import functools

import jax
import jax.numpy as jnp
from jax.experimental import pallas as pl
from jax.experimental.pallas import tpu as pltpu


def _round_up(x, m):
    return (x + m - 1) // m * m


def maxout_kernel(x_ref, w_ref, b_ref, o_ref, acc_ref, *, pool_size, out_tile):
    # x_ref:   (B_tile, In_tile)            compute dtype
    # w_ref:   (In_tile, pool*Out_tile)     compute dtype (fused pool layout)
    # b_ref:   (1, pool*Out_tile)           float32
    # o_ref:   (B_tile, Out_tile)           output dtype (lane-dense, >=128)
    # acc_ref: (B_tile, pool*Out_tile)      float32 scratch, lives across K steps
    k = pl.program_id(2)

    @pl.when(k == 0)
    def _init():
        acc_ref[...] = jnp.zeros_like(acc_ref)

    # One wide MXU matmul per K step (pool folded into the N dimension).
    acc_ref[...] += jnp.dot(x_ref[...], w_ref[...],
                            preferred_element_type=jnp.float32)

    @pl.when(k == pl.num_programs(2) - 1)
    def _finalize():
        y = acc_ref[...] + b_ref[...]          # bias per (pool, out) column, f32
        # Max over the pool_size contiguous lane slabs (static, 128-aligned).
        m = y[:, 0:out_tile]
        for p in range(1, pool_size):          # small, statically unrolled
            m = jnp.maximum(m, y[:, p * out_tile:(p + 1) * out_tile])
        o_ref[...] = m.astype(o_ref.dtype)


def prepare_maxout_params(w_pt, b_pt, in_feature, out_feature, pool_size,
                          compute_dtype=jnp.bfloat16):
    """Repack nn.Linear(in, out*pool) parameters ONCE (hoisted out of the hot
    path) into the fused, padded, lane-dense layout the kernel consumes.

    Linear output column j corresponds to (o, p) with j = o*pool + p (this is
    what view(-1, out, pool).max(2) implies).  Fused column index is
    ((j_tile*pool + p) * out_tile + o_local) with o = j_tile*out_tile + o_local.
    """
    out_pad_min = _round_up(out_feature, 128)
    out_tile = 256 if out_pad_min % 256 == 0 else 128   # MXU-native N tile
    out_pad = _round_up(out_feature, out_tile)
    n_out_tiles = out_pad // out_tile

    in_tile = min(512, _round_up(in_feature, 128))
    in_pad = _round_up(in_feature, in_tile)

    # (out*pool, in) -> (in, out, pool), zero-pad in/out, regroup per out-tile.
    w = w_pt.T.reshape(in_feature, out_feature, pool_size)
    w = jnp.pad(w, ((0, in_pad - in_feature), (0, out_pad - out_feature), (0, 0)))
    w = w.reshape(in_pad, n_out_tiles, out_tile, pool_size)
    w = jnp.transpose(w, (0, 1, 3, 2))                         # (..., pool, out_tile)
    w_fused = w.reshape(in_pad, n_out_tiles * pool_size * out_tile)
    w_fused = w_fused.astype(compute_dtype)

    b = b_pt.reshape(out_feature, pool_size)
    b = jnp.pad(b, ((0, out_pad - out_feature), (0, 0)))
    b = b.reshape(n_out_tiles, out_tile, pool_size)
    b = jnp.transpose(b, (0, 2, 1)).reshape(1, n_out_tiles * pool_size * out_tile)
    b_fused = b.astype(jnp.float32)

    return dict(w=w_fused, b=b_fused,
                in_feature=in_feature, out_feature=out_feature,
                pool_size=pool_size,
                in_pad=in_pad, in_tile=in_tile,
                out_pad=out_pad, out_tile=out_tile,
                compute_dtype=compute_dtype)


def maxout(x, params):
    """x: (..., in_feature) -> (prod(leading dims), out_feature), matching the
    PyTorch forward (output.view(-1, out, pool).max(2)[0])."""
    in_feature = params["in_feature"]
    out_feature = params["out_feature"]
    pool = params["pool_size"]
    in_pad, in_tile = params["in_pad"], params["in_tile"]
    out_pad, out_tile = params["out_pad"], params["out_tile"]
    w, b = params["w"], params["b"]
    cdt = params["compute_dtype"]

    x2d = x.reshape(-1, in_feature)
    B = x2d.shape[0]
    b_tile = min(256, _round_up(B, 8))
    b_pad = _round_up(B, b_tile)

    xp = jnp.pad(x2d, ((0, b_pad - B), (0, in_pad - in_feature))).astype(cdt)

    grid = (b_pad // b_tile, out_pad // out_tile, in_pad // in_tile)
    slab = pool * out_tile

    kernel = functools.partial(maxout_kernel, pool_size=pool, out_tile=out_tile)

    cost = pl.CostEstimate(
        flops=2 * b_pad * in_pad * pool * out_pad,
        transcendentals=0,
        bytes_accessed=(w.size * w.dtype.itemsize
                        + xp.size * xp.dtype.itemsize
                        + b.size * b.dtype.itemsize
                        + b_pad * out_pad * x.dtype.itemsize),
    )

    out = pl.pallas_call(
        kernel,
        out_shape=jax.ShapeDtypeStruct((b_pad, out_pad), x.dtype),
        grid_spec=pltpu.PrefetchScalarGridSpec(
            num_scalar_prefetch=0,
            grid=grid,
            in_specs=[
                pl.BlockSpec((b_tile, in_tile), lambda i, j, k: (i, k)),   # x
                pl.BlockSpec((in_tile, slab), lambda i, j, k: (k, j)),     # w_fused
                pl.BlockSpec((1, slab), lambda i, j, k: (0, j)),           # bias
            ],
            out_specs=pl.BlockSpec((b_tile, out_tile), lambda i, j, k: (i, j)),
            scratch_shapes=[pltpu.VMEM((b_tile, slab), jnp.float32)],
        ),
        compiler_params=pltpu.CompilerParams(
            dimension_semantics=("parallel", "parallel", "arbitrary"),
            vmem_limit_bytes=32 * 1024 * 1024,   # sized with v7x (64 MiB phys) in mind
        ),
        cost_estimate=cost,
    )(xp, w, b)

    return out[:B, :out_feature]


if __name__ == "__main__":
    in_feature, out_feature, pool_size = 32, 16, 4

    key = jax.random.PRNGKey(0)
    kx, kw, kb = jax.random.split(key, 3)
    # 3-D input: forward flattens all leading dims (view(-1, out, pool)).
    x = jax.random.normal(kx, (2, 4, in_feature), dtype=jnp.float32)
    # Deterministic synthetic nn.Linear(in, out*pool) parameters.
    w_pt = jax.random.normal(kw, (out_feature * pool_size, in_feature),
                             dtype=jnp.float32) * 0.1
    b_pt = jax.random.normal(kb, (out_feature * pool_size,),
                             dtype=jnp.float32) * 0.1

    # Pure-JAX reference mirroring the PyTorch forward.
    y = x.reshape(-1, in_feature) @ w_pt.T + b_pt
    y_ref = y.reshape(-1, out_feature, pool_size).max(axis=2)

    # f32 path: exact-tolerance correctness check.
    params_f32 = prepare_maxout_params(w_pt, b_pt, in_feature, out_feature,
                                       pool_size, compute_dtype=jnp.float32)
    out_f32 = jax.block_until_ready(maxout(x, params_f32))
    assert out_f32.shape == (8, out_feature)
    assert jnp.allclose(out_f32, y_ref, atol=1e-5, rtol=1e-5)

    # bf16 streaming path (default / perf): looser tolerance for bf16 inputs.
    params_bf16 = prepare_maxout_params(w_pt, b_pt, in_feature, out_feature,
                                        pool_size)
    out_bf16 = jax.block_until_ready(maxout(x, params_bf16))
    assert out_bf16.shape == (8, out_feature)
    assert jnp.allclose(out_bf16, y_ref, atol=5e-2, rtol=5e-2)

    print("KERNEL_OK")
</pallas_src>

<mosaic_0001>
module attributes {stable_mosaic.version = 11 : i64} {
  func.func @maxout_kernel(%arg0: i32, %arg1: i32, %arg2: i32, %arg3: memref<8x128xf32, #tpu.memory_space<vmem>>, %arg4: memref<128x512xf32, #tpu.memory_space<vmem>>, %arg5: memref<1x512xf32, #tpu.memory_space<vmem>>, %arg6: memref<8x128xf32, #tpu.memory_space<vmem>>, %arg7: memref<8x512xf32, #tpu.memory_space<vmem>>) attributes {dimension_semantics = [#tpu.dimension_semantics<parallel>, #tpu.dimension_semantics<parallel>, #tpu.dimension_semantics<arbitrary>], iteration_bounds = array<i64: 1, 1, 1>, scalar_prefetch = 0 : i64, scratch_operands = 1 : i64, tpu.core_type = #tpu.core_type<tc>, window_params = [{transform_indices = @transform_0, window_bounds = array<i64: 8, 128>}, {transform_indices = @transform_1, window_bounds = array<i64: 128, 512>}, {transform_indices = @transform_2, window_bounds = array<i64: 1, 512>}, {transform_indices = @transform_3, window_bounds = array<i64: 8, 128>}]} {
    %c0_i32 = arith.constant 0 : i32
    %0 = arith.cmpi eq, %arg2, %c0_i32 : i32
    %1 = arith.extui %0 : i1 to i32
    %c0_i32_0 = arith.constant 0 : i32
    %2 = arith.cmpi ne, %1, %c0_i32_0 : i32
    scf.if %2 {
      %cst_10 = arith.constant 0.000000e+00 : f32
      %12 = vector.broadcast %cst_10 : f32 to vector<8x512xf32>
      %c0_11 = arith.constant 0 : index
      %c0_12 = arith.constant 0 : index
      %13 = vector.load %arg7[%c0_11, %c0_12] : memref<8x512xf32, #tpu.memory_space<vmem>>, vector<8x512xf32>
      tpu.vector_store %arg7[%c0_11, %c0_12], %12 {strides = array<i32>} : memref<8x512xf32, #tpu.memory_space<vmem>>, vector<8x512xf32>,
    } else {
    }
    %c0 = arith.constant 0 : index
    %c0_1 = arith.constant 0 : index
    %3 = vector.load %arg7[%c0, %c0_1] : memref<8x512xf32, #tpu.memory_space<vmem>>, vector<8x512xf32>
    %c0_2 = arith.constant 0 : index
    %c0_3 = arith.constant 0 : index
    %4 = vector.load %arg3[%c0_2, %c0_3] : memref<8x128xf32, #tpu.memory_space<vmem>>, vector<8x128xf32>
    %c0_4 = arith.constant 0 : index
    %c0_5 = arith.constant 0 : index
    %5 = vector.load %arg4[%c0_4, %c0_5] : memref<128x512xf32, #tpu.memory_space<vmem>>, vector<128x512xf32>
    %cst = arith.constant dense<0.000000e+00> : vector<8x512xf32>
    %6 = tpu.matmul %4, %5, %cst {dimension_numbers = #tpu.dot_dimension_numbers<[1], [0], [0], [1], [0, 0, 1, 1], [], []>} : vector<8x128xf32>, vector<128x512xf32>, vector<8x512xf32> -> vector<8x512xf32>
    %7 = arith.addf %3, %6 : vector<8x512xf32>
    %c0_6 = arith.constant 0 : index
    %c0_7 = arith.constant 0 : index
    %8 = vector.load %arg7[%c0_6, %c0_7] : memref<8x512xf32, #tpu.memory_space<vmem>>, vector<8x512xf32>
    tpu.vector_store %arg7[%c0_6, %c0_7], %7 {strides = array<i32>} : memref<8x512xf32, #tpu.memory_space<vmem>>, vector<8x512xf32>,
    %c0_i32_8 = arith.constant 0 : i32
    %9 = arith.cmpi eq, %arg2, %c0_i32_8 : i32
    %10 = arith.extui %9 : i1 to i32
    %c0_i32_9 = arith.constant 0 : i32
    %11 = arith.cmpi ne, %10, %c0_i32_9 : i32
    scf.if %11 {
      %c0_10 = arith.constant 0 : index
      %c0_11 = arith.constant 0 : index
      %12 = vector.load %arg7[%c0_10, %c0_11] : memref<8x512xf32, #tpu.memory_space<vmem>>, vector<8x512xf32>
      %c0_12 = arith.constant 0 : index
      %c0_13 = arith.constant 0 : index
      %13 = vector.load %arg5[%c0_12, %c0_13] : memref<1x512xf32, #tpu.memory_space<vmem>>, vector<1x512xf32>
      %14 = vector.broadcast %13 : vector<1x512xf32> to vector<8x512xf32>
      %15 = arith.addf %12, %14 : vector<8x512xf32>
      %16 = vector.extract_strided_slice %15 {offsets = [0, 0], sizes = [8, 128], strides = [1, 1]} : vector<8x512xf32> to vector<8x128xf32>
      %17 = vector.extract_strided_slice %15 {offsets = [0, 128], sizes = [8, 128], strides = [1, 1]} : vector<8x512xf32> to vector<8x128xf32>
      %18 = arith.maximumf %16, %17 : vector<8x128xf32>
      %19 = vector.extract_strided_slice %15 {offsets = [0, 256], sizes = [8, 128], strides = [1, 1]} : vector<8x512xf32> to vector<8x128xf32>
      %20 = arith.maximumf %18, %19 : vector<8x128xf32>
      %21 = vector.extract_strided_slice %15 {offsets = [0, 384], sizes = [8, 128], strides = [1, 1]} : vector<8x512xf32> to vector<8x128xf32>
      %22 = arith.maximumf %20, %21 : vector<8x128xf32>
      %c0_14 = arith.constant 0 : index
      %c0_15 = arith.constant 0 : index
      %23 = vector.load %arg6[%c0_14, %c0_15] : memref<8x128xf32, #tpu.memory_space<vmem>>, vector<8x128xf32>
      tpu.vector_store %arg6[%c0_14, %c0_15], %22 {strides = array<i32>} : memref<8x128xf32, #tpu.memory_space<vmem>>, vector<8x128xf32>,
    } else {
    }
    return
  }
  func.func @transform_0(%arg0: i32, %arg1: i32, %arg2: i32) -> (i32, i32) {
    %c0_i32 = arith.constant 0 : i32
    return %arg0, %arg2 : i32, i32
  }
  func.func @transform_1(%arg0: i32, %arg1: i32, %arg2: i32) -> (i32, i32) {
    %c0_i32 = arith.constant 0 : i32
    return %arg2, %arg1 : i32, i32
  }
  func.func @transform_2(%arg0: i32, %arg1: i32, %arg2: i32) -> (i32, i32) {
    %c0_i32 = arith.constant 0 : i32
    %c0_i32_0 = arith.constant 0 : i32
    return %c0_i32, %arg1 : i32, i32
  }
  func.func @transform_3(%arg0: i32, %arg1: i32, %arg2: i32) -> (i32, i32) {
    %c0_i32 = arith.constant 0 : i32
    return %arg0, %arg1 : i32, i32
  }
}

</mosaic_0001>

<bundles_post_ra>
// kernel: tpu_custom_call.1
= control target key start
LH: loop header
LB: loop body
LE: loop exit
PB: predicated region body
PF: predicated region fallthrough
CT: control target
= control target key end

     0   :  { %8 = vsyncpa [#allocation4], 0  ;;  %s535_s0 = inlined_call_operand.hbm [shape: f32[8,128], index: 0, kind: input, shape index: {}]   ;;  %s536_s1 = inlined_call_operand.hbm [shape: f32[128,512], index: 1, kind: input, shape index: {}]   ;;  %s537_s2 = inlined_call_operand.vmem [shape: f32[1,512], index: 2, kind: input, shape index: {}]   ;;  %s538_s3 = inlined_call_operand.hbm [shape: f32[8,128], index: 3, kind: output, shape index: {}]  }
   0x1   :  { %9 = vsyncpa [#allocation7], 0 }
   0x2   :  { %10 = vsyncpa [#allocation5], 0  ;;  %s463_s12 = smov [#allocation3]   ;;  %s464_s14 = smov [#allocation6]  }
   0x3   :  { %s17_s13 = sshll.u32 %s463_s12, 4  ;;  %s26_s15 = sshll.u32 %s464_s14, 4  ;;  %s18_s13 = int_to_ptr.vmem [resolvable:$true] %s17_s13  ;;  %s489_s15 = int_to_ptr.vmem [resolvable:$true] %s26_s15 }
   0x4   :  { %s391_s18 = scalar_lea.hbm %s535_s0, 128 }
   0x5   :  { %p392_p0 = scmp.ne.s32.totalorder %s535_s0, %s391_s18  ;;  %p395_p1 = scmp.lt.u32.totalorder %s391_s18, %s535_s0 }
   0x7   :  { %p397_p2 = pnand %p395_p1, %p392_p0 }
   0x9   :  { %400 = shalt.err (!%p397_p2)
}
   0xa   :  { %s401_s23 = scalar_lea.vmem %s18_s13, 128  ;;  %p406_p4 = scmp.lt.s32.totalorder %s18_s13, %s18_s13 }
   0xb   :  { %p402_p3 = scmp.ne.s32.totalorder %s18_s13, %s401_s23  ;;  %p407_p5 = scmp.lt.s32.totalorder %s401_s23, %s401_s23 }
   0xd   :  { %p408_p6 = por %p407_p5, %p406_p4 }
   0xf   :  { %p409_p7 = pnand %p408_p6, %p402_p3 }
  0x11   :  { %412 = shalt.err (!%p409_p7)
}
  0x12   :  { %20 = dma.hbm_to_vmem [thread:$0]  %s535_s0, 128, %s18_s13, [#allocation4]  }
  0x13   :  { %s413_s28 = scalar_lea.hbm %s536_s1, 8192 }
  0x14   :  { %p414_p8 = scmp.ne.s32.totalorder %s536_s1, %s413_s28  ;;  %p417_p9 = scmp.lt.u32.totalorder %s413_s28, %s536_s1 }
  0x16   :  { %p419_p10 = pnand %p417_p9, %p414_p8 }
  0x18   :  { %422 = shalt.err (!%p419_p10)
}
  0x19   :  { %s423_s6 = scalar_lea.vmem %s489_s15, 8192  ;;  %p428_p12 = scmp.lt.s32.totalorder %s489_s15, %s489_s15 }
  0x1a   :  { %p424_p11 = scmp.ne.s32.totalorder %s489_s15, %s423_s6  ;;  %p429_p13 = scmp.lt.s32.totalorder %s423_s6, %s423_s6 }
  0x1c   :  { %p430_p0 = por %p429_p13, %p428_p12 }
  0x1e   :  { %p431_p1 = pnand %p430_p0, %p424_p11 }
  0x20   :  { %434 = shalt.err (!%p431_p1)
}
  0x21   :  { %s465_s0 = smov 512   ;;  %s466_s7 = smov 32  }
  0x22   :  { %32 = dma.hbm_to_vmem [thread:$0]  %s536_s1, 8192, %s489_s15, [#allocation7], %s465_s0, %s465_s0, %s466_s7  }
  0x23   :  { %457 = dma.done.wait [#allocation4], 128  }
  0x24   :  { %458 = vsyncadd [#allocation4], 4294967168 }
  0x25   :  { %459 = dma.done.wait [#allocation7], 8192  }
  0x26   :  { %460 = vsyncadd [#allocation7], 4294959104  ;;  %v467_v0 = vmov 0.0   ;;  %v55_v1 = vld [vmem:[#allocation6 + $0x8] sm:$0xff]  ;;  %v54_v3 = vld [vmem:[#allocation6] sm:$0xff]  ;;  %s468_s11 = smov [#allocation8]  }
  0x27   :  { %182 = vmatprep.mubr.f32.mxu0 %v467_v0  ;;  %253 = vmatprep.mubr.f32.mxu1 %v467_v0  ;;  %v59_v2 = vld [vmem:[#allocation6 + $0x28] sm:$0xff]  ;;  %v58_v5 = vld [vmem:[#allocation6 + $0x20] sm:$0xff]  ;;  %v57_v6 = vld [vmem:[#allocation6 + $0x18] sm:$0xff]  ;;  %s311_s12 = sshll.u32 %s468_s11, 4  ;;  %s312_s12 = int_to_ptr.vmem [resolvable:$true] %s311_s12 }
  0x28   :  { %v321_v4 = vpack.c.bf16 %v59_v2, %v55_v1  ;;  %v61_v7 = vld [vmem:[#allocation6 + $0x38] sm:$0xff]  ;;  %v323_v8 = vpack.c.bf16 %v58_v5, %v54_v3  ;;  %v56_v10 = vld [vmem:[#allocation6 + $0x10] sm:$0xff]  ;;  %v63_v12 = vld [vmem:[#allocation6 + $0x48] sm:$0xff]  ;;  %p440_p3 = scmp.lt.s32.totalorder %s312_s12, %s312_s12 }
  0x29   :  { %v353_v9 = vpack.c.bf16 %v61_v7, %v57_v6  ;;  %v60_v11 = vld [vmem:[#allocation6 + $0x30] sm:$0xff]  ;;  %v67_v14 = vld [vmem:[#allocation6 + $0x68] sm:$0xff]  ;;  %v62_v15 = vld [vmem:[#allocation6 + $0x40] sm:$0xff] }
  0x2a   :  { %322 = vmatprep.subr.bf16.mxu0 %v321_v4  ;;  %v355_v13 = vpack.c.bf16 %v60_v11, %v56_v10  ;;  %v66_v16 = vld [vmem:[#allocation6 + $0x60] sm:$0xff]  ;;  %v325_v17 = vpack.c.bf16 %v67_v14, %v63_v12  ;;  %v65_v19 = vld [vmem:[#allocation6 + $0x58] sm:$0xff]  ;;  %v64_v21 = vld [vmem:[#allocation6 + $0x50] sm:$0xff] }
  0x2b   :  { %324 = vmatpush1.bf16.msra.mxu0 %v323_v8  ;;  %354 = vmatprep.subr.bf16.mxu1 %v353_v9  ;;  %v327_v18 = vpack.c.bf16 %v66_v16, %v62_v15  ;;  %v69_v20 = vld [vmem:[#allocation6 + $0x78] sm:$0xff]  ;;  %v68_v23 = vld [vmem:[#allocation6 + $0x70] sm:$0xff]  ;;  %v71_v24 = vld [vmem:[#allocation6 + $0x88] sm:$0xff] }
  0x2c   :  { %356 = vmatpush1.bf16.msra.mxu1 %v355_v13  ;;  %v357_v22 = vpack.c.bf16 %v69_v20, %v65_v19  ;;  %v75_v25 = vld [vmem:[#allocation6 + $0xa8] sm:$0xff]  ;;  %326 = vmatprep.subr.bf16.mxu0 %v325_v17  ;;  %v359_v26 = vpack.c.bf16 %v68_v23, %v64_v21  ;;  %v70_v28 = vld [vmem:[#allocation6 + $0x80] sm:$0xff]  ;;  %v73_v30 = vld [vmem:[#allocation6 + $0x98] sm:$0xff] }
  0x2d   :  { %v329_v27 = vpack.c.bf16 %v75_v25, %v71_v24  ;;  %v74_v29 = vld [vmem:[#allocation6 + $0xa0] sm:$0xff]  ;;  %v77_v31 = vld [vmem:[#allocation6 + $0xb8] sm:$0xff]  ;;  %v72_v32 = vld [vmem:[#allocation6 + $0x90] sm:$0xff] }
  0x2e   :  { %358 = vmatprep.subr.bf16.mxu1 %v357_v22  ;;  %v76_v33 = vld [vmem:[#allocation6 + $0xb0] sm:$0xff]  ;;  %v331_v34 = vpack.c.bf16 %v74_v29, %v70_v28  ;;  %v361_v35 = vpack.c.bf16 %v77_v31, %v73_v30  ;;  %v79_v36 = vld [vmem:[#allocation6 + $0xc8] sm:$0xff]  ;;  %v78_v38 = vld [vmem:[#allocation6 + $0xc0] sm:$0xff] }
  0x2f   :  { %328 = vmatpush1.bf16.msra.mxu0 %v327_v18  ;;  %v83_v37 = vld [vmem:[#allocation6 + $0xe8] sm:$0xff]  ;;  %v363_v39 = vpack.c.bf16 %v76_v33, %v72_v32  ;;  %v82_v41 = vld [vmem:[#allocation6 + $0xe0] sm:$0xff]  ;;  %v81_v42 = vld [vmem:[#allocation6 + $0xd8] sm:$0xff] }
  0x30   :  { %360 = vmatpush1.bf16.msra.mxu1 %v359_v26  ;;  %330 = vmatprep.subr.bf16.mxu0 %v329_v27  ;;  %v333_v40 = vpack.c.bf16 %v83_v37, %v79_v36  ;;  %v85_v43 = vld [vmem:[#allocation6 + $0xf8] sm:$0xff]  ;;  %v80_v45 = vld [vmem:[#allocation6 + $0xd0] sm:$0xff]  ;;  %v87_v47 = vld [vmem:[#allocation6 + $0x108] sm:$0xff]  ;;  %v335_v49 = vpack.c.bf16 %v82_v41, %v78_v38 }
  0x31   :  { %362 = vmatprep.subr.bf16.mxu1 %v361_v35  ;;  %v365_v44 = vpack.c.bf16 %v85_v43, %v81_v42  ;;  %v84_v46 = vld [vmem:[#allocation6 + $0xf0] sm:$0xff]  ;;  %v91_v48 = vld [vmem:[#allocation6 + $0x128] sm:$0xff]  ;;  %v89_v50 = vld [vmem:[#allocation6 + $0x118] sm:$0xff] }
  0x32   :  { %v93_v51 = vld [vmem:[#allocation6 + $0x138] sm:$0xff]  ;;  %v367_v52 = vpack.c.bf16 %v84_v46, %v80_v45  ;;  %v337_v53 = vpack.c.bf16 %v91_v48, %v87_v47  ;;  %v86_v54 = vld [vmem:[#allocation6 + $0x100] sm:$0xff]  ;;  %v88_v56 = vld [vmem:[#allocation6 + $0x110] sm:$0xff] }
  0x33   :  { %332 = vmatpush1.bf16.msra.mxu0 %v331_v34  ;;  %v90_v55 = vld [vmem:[#allocation6 + $0x120] sm:$0xff]  ;;  %v369_v57 = vpack.c.bf16 %v93_v51, %v89_v50  ;;  %v92_v58 = vld [vmem:[#allocation6 + $0x130] sm:$0xff]  ;;  %v95_v59 = vld [vmem:[#allocation6 + $0x148] sm:$0xff]  ;;  %v277_v34 = vlaneseq }
  0x34   :  { %364 = vmatpush1.bf16.msra.mxu1 %v363_v39  ;;  %334 = vmatprep.subr.bf16.mxu0 %v333_v40  ;;  %v99_v60 = vld [vmem:[#allocation6 + $0x168] sm:$0xff]  ;;  %v97_v61 = vld [vmem:[#allocation6 + $0x158] sm:$0xff]  ;;  %v339_v63 = vpack.c.bf16 %v90_v55, %v86_v54  ;;  %v371_v0 = vpack.c.bf16 %v92_v58, %v88_v56  ;;  %v94_v2 = vld [vmem:[#allocation6 + $0x140] sm:$0xff] }
  0x35   :  { %366 = vmatprep.subr.bf16.mxu1 %v365_v44  ;;  %v101_v62 = vld [vmem:[#allocation6 + $0x178] sm:$0xff]  ;;  %v341_v1 = vpack.c.bf16 %v99_v60, %v95_v59  ;;  %v98_v3 = vld [vmem:[#allocation6 + $0x160] sm:$0xff]  ;;  %v96_v4 = vld [vmem:[#allocation6 + $0x150] sm:$0xff]  ;;  %v278_v35 = vshrl.u32 %v277_v34, 7 }
  0x36   :  { %v373_v5 = vpack.c.bf16 %v101_v62, %v97_v61  ;;  %v100_v6 = vld [vmem:[#allocation6 + $0x170] sm:$0xff]  ;;  %v103_v7 = vld [vmem:[#allocation6 + $0x188] sm:$0xff]  ;;  %v105_v9 = vld [vmem:[#allocation6 + $0x198] sm:$0xff]  ;;  %v343_v11 = vpack.c.bf16 %v98_v3, %v94_v2 }
  0x37   :  { %336 = vmatpush1.bf16.msra.mxu0 %v335_v49  ;;  %v107_v8 = vld [vmem:[#allocation6 + $0x1a8] sm:$0xff]  ;;  %v109_v10 = vld [vmem:[#allocation6 + $0x1b8] sm:$0xff]  ;;  %v375_v12 = vpack.c.bf16 %v100_v6, %v96_v4  ;;  %v102_v14 = vld [vmem:[#allocation6 + $0x180] sm:$0xff]  ;;  %v279_v36 = vsub.s32 0, %v278_v35  ;;  %v283_v38 = vsub.s32 1, %v278_v35  ;;  %v287_v39 = vsub.s32 2, %v278_v35 }
  0x38   :  { %368 = vmatpush1.bf16.msra.mxu1 %v367_v52  ;;  %338 = vmatprep.subr.bf16.mxu0 %v337_v53  ;;  %v345_v13 = vpack.c.bf16 %v107_v8, %v103_v7  ;;  %v106_v15 = vld [vmem:[#allocation6 + $0x1a0] sm:$0xff]  ;;  %v104_v16 = vld [vmem:[#allocation6 + $0x190] sm:$0xff]  ;;  %v377_v17 = vpack.c.bf16 %v109_v10, %v105_v9  ;;  %v111_v19 = vld [vmem:[#allocation6 + $0x1c8] sm:$0xff]  ;;  %v291_v43 = vsub.s32 3, %v278_v35 }
  0x39   :  { %370 = vmatprep.subr.bf16.mxu1 %v369_v57  ;;  %v108_v18 = vld [vmem:[#allocation6 + $0x1b0] sm:$0xff]  ;;  %v115_v20 = vld [vmem:[#allocation6 + $0x1e8] sm:$0xff]  ;;  %v113_v21 = vld [vmem:[#allocation6 + $0x1d8] sm:$0xff]  ;;  %v347_v23 = vpack.c.bf16 %v106_v15, %v102_v14 }
  0x3a   :  { %v117_v22 = vld [vmem:[#allocation6 + $0x1f8] sm:$0xff]  ;;  %v379_v24 = vpack.c.bf16 %v108_v18, %v104_v16  ;;  %v349_v25 = vpack.c.bf16 %v115_v20, %v111_v19  ;;  %v110_v26 = vld [vmem:[#allocation6 + $0x1c0] sm:$0xff]  ;;  %v112_v29 = vld [vmem:[#allocation6 + $0x1d0] sm:$0xff] }
  0x3b   :  { %340 = vmatpush1.bf16.msra.mxu0 %v339_v63  ;;  %v114_v27 = vld [vmem:[#allocation6 + $0x1e0] sm:$0xff]  ;;  %v381_v28 = vpack.c.bf16 %v117_v22, %v113_v21  ;;  %v116_v30 = vld [vmem:[#allocation6 + $0x1f0] sm:$0xff]  ;;  %v53_v33 = vld [vmem:[#allocation3] sm:$0xff] }
  0x3c   :  { %372 = vmatpush1.bf16.msra.mxu1 %v371_v0  ;;  %342 = vmatprep.subr.bf16.mxu0 %v341_v1  ;;  %v351_v31 = vpack.c.bf16 %v114_v27, %v110_v26  ;;  %v383_v32 = vpack.c.bf16 %v116_v30, %v112_v29  ;;  %v275_v37 = vld [vmem:[%s537_s2] sm:$0xf]  ;;  %s435_s2 = scalar_lea.vmem %s312_s12, 128 }
  0x3d   :  { %374 = vmatprep.subr.bf16.mxu1 %v373_v5  ;;  %v280_v40 = vrot.slane %v275_v37, %v279_v36  ;;  %v284_v41 = vrot.slane %v275_v37, %v283_v38  ;;  %v288_v42 = vrot.slane %v275_v37, %v287_v39  ;;  %v292_v51 = vrot.slane %v275_v37, %v291_v43  ;;  %p436_p2 = scmp.ne.s32.totalorder %s312_s12, %s435_s2  ;;  %p441_p4 = scmp.lt.s32.totalorder %s435_s2, %s435_s2 }
  0x3f   :  { %344 = vmatpush1.bf16.msra.mxu0 %v343_v11  ;;  %p442_p5 = por %p441_p4, %p440_p3 }
  0x40   :  { %376 = vmatpush1.bf16.msra.mxu1 %v375_v12  ;;  %346 = vmatprep.subr.bf16.mxu0 %v345_v13 }
  0x41   :  { %378 = vmatprep.subr.bf16.mxu1 %v377_v17  ;;  %p443_p6 = pnand %p442_p5, %p436_p2 }
  0x43   :  { %348 = vmatpush1.bf16.msra.mxu0 %v347_v23 }
  0x44   :  { %380 = vmatpush1.bf16.msra.mxu1 %v379_v24  ;;  %350 = vmatprep.subr.bf16.mxu0 %v349_v25 }
  0x45   :  { %382 = vmatprep.subr.bf16.mxu1 %v381_v28 }
  0x47   :  { %352 = vmatpush1.bf16.msra.mxu0 %v351_v31 }
  0x48   :  { %384 = vmatpush1.bf16.msra.mxu1 %v383_v32 }
  0x4a   :  { %183 = vmatmul.mubr.f32.vlgmr.msra.gmra.mrb[0].mxu0 %v53_v33 }
  0x4b   :  { %254 = vmatmul.mubr.f32.vlgmr.msra.gmra.mrb[0].mxu1 %v53_v33 }
 0x11d   :  { %v184_v44 = vpop.f32.mrb[0].mxu0 }
 0x11e   :  { %v297_v45 = vadd.f32 %v280_v40, %v184_v44  ;;  %v186_v46 = vpop.f32.mrb[1].mxu0  ;;  %v255_v47 = vpop.f32.mrb[0].mxu1 }
 0x11f   :  { %v298_v48 = vadd.f32 %v284_v41, %v186_v46  ;;  %v299_v49 = vadd.f32 %v288_v42, %v255_v47  ;;  %v257_v50 = vpop.f32.mrb[1].mxu1 }
 0x120   :  { %v300_v54 = vadd.f32 %v292_v51, %v257_v50 }
 0x121   :  { %v301_v52 = vmax.f32 %v297_v45, %v298_v48 }
 0x123   :  { %v302_v53 = vmax.f32 %v301_v52, %v299_v49 }
 0x125   :  { %v303_v55 = vmax.f32 %v302_v53, %v300_v54 }
 0x127   :  { %304 = vst [vmem:[#allocation8] sm:$0xff] %v303_v55 }
 0x128   :  { %446 = shalt.err (!%p443_p6)
}
 0x129   :  { %s447_s15 = scalar_lea.hbm %s538_s3, 128 }
 0x12a   :  { %p448_p7 = scmp.ne.s32.totalorder %s538_s3, %s447_s15  ;;  %p451_p8 = scmp.lt.u32.totalorder %s447_s15, %s538_s3 }
 0x12c   :  { %p453_p9 = pnand %p451_p8, %p448_p7 }
 0x12e   :  { %456 = shalt.err (!%p453_p9)
}
 0x12f   :  { %314 = dma.vmem_to_hbm [thread:$0]  %s312_s12, 128, %s538_s3, [#allocation5]  }
 0x130   :  { %461 = dma.done.wait [#allocation5], 128  }
 0x131   :  { %462 = vsyncadd [#allocation5], 4294967168 }
 0x132   :  { %318 = vsyncpa [#allocation4], 1 }
 0x133   :  { %319 = vsyncpa [#allocation7], 1 }
 0x134   :  { %320 = vsyncpa [#allocation5], 1 }

</bundles_post_ra>
